<compile_context>
chip_gen: v7x
topology: tpu7x:2x2x1
jax: 0.10.0
libtpu: 0.0.40
codegen_flags: <defaults>
</compile_context>

<pallas_src>
import jax
import jax.numpy as jnp
from jax.experimental import pallas as pl
from jax.experimental.pallas import tpu as pltpu


# ----------------------------- Pallas kernel ------------------------------ #
def _gemm_bias_pos_kernel(p_ref, w_ref, pos_ref, o_ref):
    # p_ref:   (tm, Kp)  bf16 patch rows
    # w_ref:   (Kp, tn)  bf16 conv weight (reshaped, transposed)
    # pos_ref: (tm, tn)  f32  (position embedding + conv bias), tiled to tm rows
    # o_ref:   (tm, tn)  f32
    acc = jnp.dot(p_ref[...], w_ref[...], preferred_element_type=jnp.float32)
    o_ref[...] = acc + pos_ref[...]


def _round_up(x, m):
    return (x + m - 1) // m * m


def patch_embed_pallas(patches, w_mat, bias, pos):
    """patches: (B, Np, K); w_mat: (K, D); bias: (D,); pos: (Np, D). -> (B, Np, D) f32."""
    B, Np, K = patches.shape
    D = w_mat.shape[1]

    Np_pad = _round_up(Np, 8)
    K_pad = _round_up(K, 128)
    D_pad = _round_up(D, 128)
    M = B * Np_pad

    # bf16 MXU inputs, flattened over batch; f32 (pos + bias).
    p = jnp.pad(patches.astype(jnp.bfloat16),
                ((0, 0), (0, Np_pad - Np), (0, K_pad - K)))
    p = p.reshape(M, K_pad)
    w = jnp.pad(w_mat.astype(jnp.bfloat16), ((0, K_pad - K), (0, D_pad - D)))
    pos_pb = jnp.pad((pos + bias[None, :]).astype(jnp.float32),
                     ((0, Np_pad - Np), (0, D_pad - D)))

    # M tile: a multiple of Np_pad rows (so the pos pattern repeats exactly),
    # ~256 rows when possible to keep the MXU fed and amortize grid overhead.
    if M <= 256:
        tm = M
    else:
        r_max = max(1, 256 // Np_pad)
        r = 1
        for cand in range(r_max, 0, -1):
            if B % cand == 0:
                r = cand
                break
        tm = r * Np_pad
    pos_tile = jnp.tile(pos_pb, (tm // Np_pad, 1))        # (tm, D_pad)

    # N tile: lane-dense multiple of 128.
    if D_pad <= 256:
        tn = D_pad
    else:
        tn = 256 if D_pad % 256 == 0 else 128

    grid = (M // tm, D_pad // tn)

    out = pl.pallas_call(
        _gemm_bias_pos_kernel,
        out_shape=jax.ShapeDtypeStruct((M, D_pad), jnp.float32),
        grid=grid,
        in_specs=[
            pl.BlockSpec((tm, K_pad), lambda m, n: (m, 0)),
            pl.BlockSpec((K_pad, tn), lambda m, n: (0, n)),
            pl.BlockSpec((tm, tn), lambda m, n: (0, n)),
        ],
        out_specs=pl.BlockSpec((tm, tn), lambda m, n: (m, n)),
        compiler_params=pltpu.CompilerParams(
            dimension_semantics=("parallel", "parallel")),
    )(p, w, pos_tile)

    return out.reshape(B, Np_pad, D_pad)[:, :Np, :D]


# ------------------------------- JAX glue --------------------------------- #
def extract_patches(x, P):
    """x: (B, C, H, W) NCHW -> (B, Np, C*P*P); token order = row-major grid,
    feature order = (c, ph, pw) to match PyTorch Conv2d weight flattening.
    (Fused by jit with the bf16 cast / pad into one relayout.)"""
    B, C, H, W = x.shape
    gh, gw = H // P, W // P
    x = x.reshape(B, C, gh, P, gw, P)
    x = x.transpose(0, 2, 4, 1, 3, 5)          # (B, gh, gw, C, P, P)
    return x.reshape(B, gh * gw, C * P * P)


def conv_patchify_embed(x, w, b, pos):
    """Conv2d(k=s=P) -> flatten(2) -> transpose(-1,-2) -> + position_embeddings."""
    D, C, P, _ = w.shape
    patches = extract_patches(x, P)            # (B, Np, K)
    w_mat = w.reshape(D, C * P * P).T          # (K, D)
    return patch_embed_pallas(patches, w_mat, b, pos)


def embeddings_forward(x, features, params):
    """Mirrors Embeddings.forward (eval mode)."""
    pos = params["pos"]                                       # (Np, D)
    emb = conv_patchify_embed(x, params["pe_w"], params["pe_b"], pos)
    # self.dropout: identity (eval)
    features_embed = []
    for i, f in enumerate(features):
        fw, fb = params["fe_w"][i], params["fe_b"][i]
        fe = conv_patchify_embed(f, fw, fb, pos)
        # self.features_drop[i]: identity (eval)
        features_embed.append(fe)
    return emb, features_embed, features


# --------------------------- reference (pure JAX) -------------------------- #
def ref_patchify_embed(x, w, b, pos):
    """Conv2d reference using the same bf16-input / f32-accumulate numerics."""
    D, C, P, _ = w.shape
    y = jax.lax.conv_general_dilated(
        x.astype(jnp.bfloat16), w.astype(jnp.bfloat16),
        window_strides=(P, P), padding="VALID",
        dimension_numbers=("NCHW", "OIHW", "NCHW"),
        preferred_element_type=jnp.float32)
    y = y + b.reshape(1, D, 1, 1)
    B = x.shape[0]
    y = y.reshape(B, D, -1).transpose(0, 2, 1)                # (B, Np, D)
    return y + pos[None]


# --------------------------------- main ------------------------------------ #
if __name__ == "__main__":
    key = jax.random.PRNGKey(0)

    # Small config: img 16, patch 4 -> 4x4 = 16 patches, hidden 32, in_ch 4.
    B, C, H, W = 2, 4, 16, 16
    P, D = 4, 32
    Np = (H // P) * (W // P)

    ks = jax.random.split(key, 12)
    x = jax.random.normal(ks[0], (B, C, H, W), jnp.float32)

    # patch_embeddings Conv2d(C -> D, kernel=stride=P)
    pe_w = jax.random.normal(ks[1], (D, C, P, P), jnp.float32) * 0.05
    pe_b = jax.random.normal(ks[2], (D,), jnp.float32) * 0.05

    # position_embeddings (module inits zeros; random here to exercise the add)
    pos = jax.random.normal(ks[3], (Np, D), jnp.float32) * 0.02

    # feature embedding convs (scaled-down analog of [512,256,64]->768, k=s=[2,4,8])
    feat_in = [16, 8, 4]
    feat_sk = [2, 4, 8]
    features, fe_w, fe_b = [], [], []
    for i, (ci, sk) in enumerate(zip(feat_in, feat_sk)):
        hw = (H // P) * sk                      # so each yields Np patches
        features.append(jax.random.normal(ks[4 + i], (B, ci, hw, hw), jnp.float32))
        fe_w.append(jax.random.normal(ks[7 + i], (D, ci, sk, sk), jnp.float32) * 0.05)
        fe_b.append(jax.random.normal(ks[10], (D,), jnp.float32) * 0.05)

    params = {"pe_w": pe_w, "pe_b": pe_b, "pos": pos, "fe_w": fe_w, "fe_b": fe_b}

    fwd = jax.jit(embeddings_forward)
    emb, feats_embed, feats_out = fwd(x, features, params)
    jax.block_until_ready(emb)
    jax.block_until_ready(feats_embed)

    # sanity check against a conv reference with matching bf16-input numerics
    ref = ref_patchify_embed(x, pe_w, pe_b, pos)
    assert emb.shape == (B, Np, D)
    assert jnp.allclose(emb, ref, atol=1e-2, rtol=1e-2)
    for i in range(3):
        r = ref_patchify_embed(features[i], fe_w[i], fe_b[i], pos)
        assert feats_embed[i].shape == (B, Np, D)
        assert jnp.allclose(feats_embed[i], r, atol=1e-2, rtol=1e-2)

    print("KERNEL_OK")
</pallas_src>

<mosaic_0001>
module attributes {stable_mosaic.version = 11 : i64} {
  func.func @_gemm_bias_pos_kernel(%arg0: i32, %arg1: i32, %arg2: memref<32x256xbf16, #tpu.memory_space<vmem>>, %arg3: memref<256x128xbf16, #tpu.memory_space<vmem>>, %arg4: memref<32x128xf32, #tpu.memory_space<vmem>>, %arg5: memref<32x128xf32, #tpu.memory_space<vmem>>) attributes {dimension_semantics = [#tpu.dimension_semantics<parallel>, #tpu.dimension_semantics<parallel>], iteration_bounds = array<i64: 1, 1>, scalar_prefetch = 0 : i64, scratch_operands = 0 : i64, tpu.core_type = #tpu.core_type<tc>, window_params = [{transform_indices = @transform_0, window_bounds = array<i64: 32, 256>}, {transform_indices = @transform_1, window_bounds = array<i64: 256, 128>}, {transform_indices = @transform_2, window_bounds = array<i64: 32, 128>}, {transform_indices = @transform_3, window_bounds = array<i64: 32, 128>}]} {
    %c0 = arith.constant 0 : index
    %c0_0 = arith.constant 0 : index
    %0 = vector.load %arg2[%c0, %c0_0] : memref<32x256xbf16, #tpu.memory_space<vmem>>, vector<32x256xbf16>
    %c0_1 = arith.constant 0 : index
    %c0_2 = arith.constant 0 : index
    %1 = vector.load %arg3[%c0_1, %c0_2] : memref<256x128xbf16, #tpu.memory_space<vmem>>, vector<256x128xbf16>
    %cst = arith.constant dense<0.000000e+00> : vector<32x128xf32>
    %2 = tpu.matmul %0, %1, %cst {dimension_numbers = #tpu.dot_dimension_numbers<[1], [0], [0], [1], [0, 0, 1, 1], [], []>} : vector<32x256xbf16>, vector<256x128xbf16>, vector<32x128xf32> -> vector<32x128xf32>
    %c0_3 = arith.constant 0 : index
    %c0_4 = arith.constant 0 : index
    %3 = vector.load %arg4[%c0_3, %c0_4] : memref<32x128xf32, #tpu.memory_space<vmem>>, vector<32x128xf32>
    %4 = arith.addf %2, %3 : vector<32x128xf32>
    %c0_5 = arith.constant 0 : index
    %c0_6 = arith.constant 0 : index
    %5 = vector.load %arg5[%c0_5, %c0_6] : memref<32x128xf32, #tpu.memory_space<vmem>>, vector<32x128xf32>
    tpu.vector_store %arg5[%c0_5, %c0_6], %4 {strides = array<i32>} : memref<32x128xf32, #tpu.memory_space<vmem>>, vector<32x128xf32>,
    return
  }
  func.func @transform_0(%arg0: i32, %arg1: i32) -> (i32, i32) {
    %c0_i32 = arith.constant 0 : i32
    %c0_i32_0 = arith.constant 0 : i32
    return %arg0, %c0_i32 : i32, i32
  }
  func.func @transform_1(%arg0: i32, %arg1: i32) -> (i32, i32) {
    %c0_i32 = arith.constant 0 : i32
    %c0_i32_0 = arith.constant 0 : i32
    return %c0_i32, %arg1 : i32, i32
  }
  func.func @transform_2(%arg0: i32, %arg1: i32) -> (i32, i32) {
    %c0_i32 = arith.constant 0 : i32
    %c0_i32_0 = arith.constant 0 : i32
    return %c0_i32, %arg1 : i32, i32
  }
  func.func @transform_3(%arg0: i32, %arg1: i32) -> (i32, i32) {
    %c0_i32 = arith.constant 0 : i32
    return %arg0, %arg1 : i32, i32
  }
}

module attributes {stable_mosaic.version = 11 : i64} {
  func.func @_gemm_bias_pos_kernel(%arg0: i32, %arg1: i32, %arg2: memref<32x128xbf16, #tpu.memory_space<vmem>>, %arg3: memref<128x128xbf16, #tpu.memory_space<vmem>>, %arg4: memref<32x128xf32, #tpu.memory_space<vmem>>, %arg5: memref<32x128xf32, #tpu.memory_space<vmem>>) attributes {dimension_semantics = [#tpu.dimension_semantics<parallel>, #tpu.dimension_semantics<parallel>], iteration_bounds = array<i64: 1, 1>, scalar_prefetch = 0 : i64, scratch_operands = 0 : i64, tpu.core_type = #tpu.core_type<tc>, window_params = [{transform_indices = @transform_0, window_bounds = array<i64: 32, 128>}, {transform_indices = @transform_1, window_bounds = array<i64: 128, 128>}, {transform_indices = @transform_2, window_bounds = array<i64: 32, 128>}, {transform_indices = @transform_3, window_bounds = array<i64: 32, 128>}]} {
    %c0 = arith.constant 0 : index
    %c0_0 = arith.constant 0 : index
    %0 = vector.load %arg2[%c0, %c0_0] : memref<32x128xbf16, #tpu.memory_space<vmem>>, vector<32x128xbf16>
    %c0_1 = arith.constant 0 : index
    %c0_2 = arith.constant 0 : index
    %1 = vector.load %arg3[%c0_1, %c0_2] : memref<128x128xbf16, #tpu.memory_space<vmem>>, vector<128x128xbf16>
    %cst = arith.constant dense<0.000000e+00> : vector<32x128xf32>
    %2 = tpu.matmul %0, %1, %cst {dimension_numbers = #tpu.dot_dimension_numbers<[1], [0], [0], [1], [0, 0, 1, 1], [], []>} : vector<32x128xbf16>, vector<128x128xbf16>, vector<32x128xf32> -> vector<32x128xf32>
    %c0_3 = arith.constant 0 : index
    %c0_4 = arith.constant 0 : index
    %3 = vector.load %arg4[%c0_3, %c0_4] : memref<32x128xf32, #tpu.memory_space<vmem>>, vector<32x128xf32>
    %4 = arith.addf %2, %3 : vector<32x128xf32>
    %c0_5 = arith.constant 0 : index
    %c0_6 = arith.constant 0 : index
    %5 = vector.load %arg5[%c0_5, %c0_6] : memref<32x128xf32, #tpu.memory_space<vmem>>, vector<32x128xf32>
    tpu.vector_store %arg5[%c0_5, %c0_6], %4 {strides = array<i32>} : memref<32x128xf32, #tpu.memory_space<vmem>>, vector<32x128xf32>,
    return
  }
  func.func @transform_0(%arg0: i32, %arg1: i32) -> (i32, i32) {
    %c0_i32 = arith.constant 0 : i32
    %c0_i32_0 = arith.constant 0 : i32
    return %arg0, %c0_i32 : i32, i32
  }
  func.func @transform_1(%arg0: i32, %arg1: i32) -> (i32, i32) {
    %c0_i32 = arith.constant 0 : i32
    %c0_i32_0 = arith.constant 0 : i32
    return %c0_i32, %arg1 : i32, i32
  }
  func.func @transform_2(%arg0: i32, %arg1: i32) -> (i32, i32) {
    %c0_i32 = arith.constant 0 : i32
    %c0_i32_0 = arith.constant 0 : i32
    return %c0_i32, %arg1 : i32, i32
  }
  func.func @transform_3(%arg0: i32, %arg1: i32) -> (i32, i32) {
    %c0_i32 = arith.constant 0 : i32
    return %arg0, %arg1 : i32, i32
  }
}

</mosaic_0001>

<bundles_post_ra>
// kernel: embeddings_forward.7
= control target key start
LH: loop header
LB: loop body
LE: loop exit
PB: predicated region body
PF: predicated region fallthrough
CT: control target
= control target key end

     0   :  { %s461_s0 = inlined_call_operand.vmem [shape: bf16[32,256], index: 0, kind: input, shape index: {}]   ;;  %s462_s1 = inlined_call_operand.vmem [shape: bf16[256,128], index: 1, kind: input, shape index: {}]   ;;  %s463_s2 = inlined_call_operand.vmem [shape: f32[32,128], index: 2, kind: input, shape index: {}]   ;;  %s464_s3 = inlined_call_operand.hbm [shape: f32[32,128], index: 3, kind: output, shape index: {}]  }
   0x1   :  { %v308_v0 = vld [vmem:[%s462_s1 + $0x40] sm:$0xff]   ;;  %v310_v2 = vld [vmem:[%s462_s1 + $0x48] sm:$0xff]   ;;  %v312_v4 = vld [vmem:[%s462_s1 + $0x50] sm:$0xff]  }
   0x2   :  { %v309_v1 = vld [vmem:[%s462_s1] sm:$0xff]   ;;  %261 = vmatprep.subr.bf16.mxu0 %v308_v0  ;;  %289 = vmatprep.subr.bf16.mxu1 %v308_v0  ;;  %v311_v3 = vld [vmem:[%s462_s1 + $0x8] sm:$0xff]   ;;  %v313_v5 = vld [vmem:[%s462_s1 + $0x10] sm:$0xff]  }
   0x3   :  { %262 = vmatpush3.bf16.msra.mxu0 %v309_v1  ;;  %297 = vmatpush3.bf16.msra.mxu1 %v309_v1  ;;  %v314_v6 = vld [vmem:[%s462_s1 + $0x58] sm:$0xff]   ;;  %v316_v8 = vld [vmem:[%s462_s1 + $0x60] sm:$0xff]   ;;  %v318_v10 = vld [vmem:[%s462_s1 + $0x68] sm:$0xff]  }
   0x4   :  { %263 = vmatprep.subr.bf16.mxu0 %v310_v2  ;;  %290 = vmatprep.subr.bf16.mxu1 %v310_v2  ;;  %v315_v7 = vld [vmem:[%s462_s1 + $0x18] sm:$0xff]   ;;  %v317_v9 = vld [vmem:[%s462_s1 + $0x20] sm:$0xff]  }
   0x5   :  { %v326_v11 = vld [vmem:[%s461_s0 + $0x4] ss:$8 sps:$4 sm:$0xff]   ;;  %v329_v12 = vld [vmem:[%s461_s0 + $0x14] ss:$8 sps:$4 sm:$0xff]  }
   0x7   :  { %264 = vmatpush3.bf16.msra.mxu0 %v311_v3  ;;  %298 = vmatpush3.bf16.msra.mxu1 %v311_v3 }
   0x8   :  { %265 = vmatprep.subr.bf16.mxu0 %v312_v4  ;;  %291 = vmatprep.subr.bf16.mxu1 %v312_v4 }
   0xb   :  { %266 = vmatpush3.bf16.msra.mxu0 %v313_v5  ;;  %299 = vmatpush3.bf16.msra.mxu1 %v313_v5 }
   0xc   :  { %267 = vmatprep.subr.bf16.mxu0 %v314_v6  ;;  %292 = vmatprep.subr.bf16.mxu1 %v314_v6 }
   0xf   :  { %268 = vmatpush3.bf16.msra.mxu0 %v315_v7  ;;  %300 = vmatpush3.bf16.msra.mxu1 %v315_v7 }
  0x10   :  { %269 = vmatprep.subr.bf16.mxu0 %v316_v8  ;;  %293 = vmatprep.subr.bf16.mxu1 %v316_v8 }
  0x11   :  { %8 = vsyncpa [#allocation3], 0  ;;  %v319_v13 = vld [vmem:[%s462_s1 + $0x28] sm:$0xff]   ;;  %v320_v14 = vld [vmem:[%s462_s1 + $0x70] sm:$0xff]   ;;  %204 = vmatprep.mubr.bf16.mxu0 %v326_v11  ;;  %212 = vmatprep.mubr.bf16.mxu1 %v329_v12 }
  0x12   :  { %v321_v15 = vld [vmem:[%s462_s1 + $0x30] sm:$0xff]   ;;  %v322_v16 = vld [vmem:[%s462_s1 + $0x78] sm:$0xff]   ;;  %v324_v18 = vld [vmem:[%s461_s0] ss:$8 sps:$4 sm:$0xff]  }
  0x13   :  { %270 = vmatpush3.bf16.msra.mxu0 %v317_v9  ;;  %301 = vmatpush3.bf16.msra.mxu1 %v317_v9  ;;  %v323_v17 = vld [vmem:[%s462_s1 + $0x38] sm:$0xff]   ;;  %v52_v22 = vld [vmem:[%s463_s2] sm:$0xff]  ;;  %v54_v24 = vld [vmem:[%s463_s2 + $0x10] sm:$0xff] }
  0x14   :  { %271 = vmatprep.subr.bf16.mxu0 %v318_v10  ;;  %294 = vmatprep.subr.bf16.mxu1 %v318_v10  ;;  %v327_v19 = vld [vmem:[%s461_s0 + $0x10] ss:$8 sps:$4 sm:$0xff]   ;;  %s354_s0 = smov [#allocation2]   ;;  %v53_v30 = vld [vmem:[%s463_s2 + $0x8] sm:$0xff] }
  0x15   :  { %s230_s28 = sshll.u32 %s354_s0, 4  ;;  %v55_v32 = vld [vmem:[%s463_s2 + $0x18] sm:$0xff]  ;;  %s231_s28 = int_to_ptr.vmem [resolvable:$true] %s230_s28 }
  0x16   :  { %s330_s6 = scalar_lea.vmem %s231_s28, 512  ;;  %p335_p1 = scmp.lt.s32.totalorder %s231_s28, %s231_s28 }
  0x17   :  { %272 = vmatpush3.bf16.msra.mxu0 %v319_v13  ;;  %302 = vmatpush3.bf16.msra.mxu1 %v319_v13  ;;  %p331_p0 = scmp.ne.s32.totalorder %s231_s28, %s330_s6  ;;  %p336_p2 = scmp.lt.s32.totalorder %s330_s6, %s330_s6 }
  0x18   :  { %273 = vmatprep.subr.bf16.mxu0 %v320_v14  ;;  %295 = vmatprep.subr.bf16.mxu1 %v320_v14 }
  0x19   :  { %p337_p3 = por %p336_p2, %p335_p1 }
  0x1b   :  { %274 = vmatpush3.bf16.msra.mxu0 %v321_v15  ;;  %303 = vmatpush3.bf16.msra.mxu1 %v321_v15  ;;  %p338_p4 = pnand %p337_p3, %p331_p0 }
  0x1c   :  { %275 = vmatprep.subr.bf16.mxu0 %v322_v16  ;;  %296 = vmatprep.subr.bf16.mxu1 %v322_v16 }
  0x1f   :  { %276 = vmatpush3.bf16.msra.mxu0 %v323_v17  ;;  %304 = vmatpush3.bf16.msra.mxu1 %v323_v17 }
  0x22   :  { %205 = vmatmul.mubr.bf16.vlgmr.msra.gmra.mrb[0].mxu0 %v324_v18  ;;  %213 = vmatmul.mubr.bf16.vlgmr.msra.gmra.mrb[0].mxu1 %v327_v19 }
  0xf5   :  { %v277_v20 = vpop.f32.mrb[0].mxu0  ;;  %v283_v21 = vpop.f32.mrb[0].mxu1 }
  0xf6   :  { %v278_v23 = vpop.f32.mrb[1].mxu0  ;;  %v284_v25 = vpop.f32.mrb[1].mxu1 }
  0xf7   :  { %v279_v26 = vadd.f32 %v278_v23, %v277_v20  ;;  %v285_v27 = vadd.f32 %v284_v25, %v283_v21  ;;  %v280_v28 = vpop.f32.mrb[2].mxu0  ;;  %v286_v29 = vpop.f32.mrb[2].mxu1 }
  0xf8   :  { %v281_v31 = vpop.f32.mrb[3].mxu0  ;;  %v287_v33 = vpop.f32.mrb[3].mxu1 }
  0xf9   :  { %v207_v34 = vadd.f32 %v279_v26, %v52_v22  ;;  %v215_v35 = vadd.f32 %v285_v27, %v54_v24  ;;  %v282_v36 = vadd.f32 %v281_v31, %v280_v28  ;;  %v288_v37 = vadd.f32 %v287_v33, %v286_v29 }
  0xfb   :  { %221 = vst [vmem:[#allocation2] sm:$0xff] %v207_v34  ;;  %223 = vst [vmem:[#allocation2 + $0x10] sm:$0xff] %v215_v35  ;;  %v210_v38 = vadd.f32 %v282_v36, %v53_v30  ;;  %v218_v39 = vadd.f32 %v288_v37, %v55_v32 }
  0xfd   :  { %222 = vst [vmem:[#allocation2 + $0x8] sm:$0xff] %v210_v38  ;;  %224 = vst [vmem:[#allocation2 + $0x18] sm:$0xff] %v218_v39 }
  0xfe   :  { %341 = shalt.err (!%p338_p4)
}
  0xff   :  { %s342_s8 = scalar_lea.hbm %s464_s3, 512 }
 0x100   :  { %p343_p5 = scmp.ne.s32.totalorder %s464_s3, %s342_s8  ;;  %p346_p6 = scmp.lt.u32.totalorder %s342_s8, %s464_s3 }
 0x102   :  { %p348_p7 = pnand %p346_p6, %p343_p5 }
 0x104   :  { %351 = shalt.err (!%p348_p7)
}
 0x105   :  { %s355_s13 = smov 128   ;;  %s356_s14 = smov 8  }
 0x106   :  { %236 = dma.vmem_to_hbm [thread:$0]  %s231_s28, 512, %s464_s3, [#allocation3], %s355_s13, %s355_s13, %s356_s14  }
 0x107   :  { %352 = dma.done.wait [#allocation3], 512  }
 0x108   :  { %353 = vsyncadd [#allocation3], 4294966784 }
 0x109   :  { %240 = vsyncpa [#allocation3], 1 }

// kernel: embeddings_forward.6
= control target key start
LH: loop header
LB: loop body
LE: loop exit
PB: predicated region body
PF: predicated region fallthrough
CT: control target
= control target key end

     0   :  { %s323_s0 = inlined_call_operand.vmem [shape: bf16[32,128], index: 0, kind: input, shape index: {}]   ;;  %s324_s1 = inlined_call_operand.vmem [shape: bf16[128,128], index: 1, kind: input, shape index: {}]   ;;  %s325_s2 = inlined_call_operand.vmem [shape: f32[32,128], index: 2, kind: input, shape index: {}]   ;;  %s326_s3 = inlined_call_operand.hbm [shape: f32[32,128], index: 3, kind: output, shape index: {}]  }
   0x1   :  { %v212_v0 = vld [vmem:[%s324_s1] sm:$0xff]   ;;  %v213_v1 = vld [vmem:[%s324_s1 + $0x8] sm:$0xff]   ;;  %v214_v2 = vld [vmem:[%s324_s1 + $0x10] sm:$0xff]  }
   0x2   :  { %189 = vmatprep.subr.bf16.mxu0 %v212_v0  ;;  %v215_v3 = vld [vmem:[%s324_s1 + $0x18] sm:$0xff]   ;;  %v220_v4 = vld [vmem:[%s323_s0] sm:$0xff]  }
   0x3   :  { %190 = vmatpush3.bf16.msra.mxu0 %v212_v0  ;;  %205 = vmatprep.mubr.bf16.mxu0 %v220_v4 }
   0x4   :  { %191 = vmatprep.subr.bf16.mxu0 %v213_v1 }
   0x7   :  { %192 = vmatpush3.bf16.msra.mxu0 %v213_v1 }
   0x8   :  { %193 = vmatprep.subr.bf16.mxu0 %v214_v2 }
   0x9   :  { %8 = vsyncpa [#allocation3], 0  ;;  %v216_v5 = vld [vmem:[%s324_s1 + $0x20] sm:$0xff]   ;;  %v217_v6 = vld [vmem:[%s324_s1 + $0x28] sm:$0xff]  }
   0xa   :  { %v218_v7 = vld [vmem:[%s324_s1 + $0x30] sm:$0xff]   ;;  %v219_v8 = vld [vmem:[%s324_s1 + $0x38] sm:$0xff]   ;;  %v221_v9 = vld [vmem:[%s323_s0 + $0x8] sm:$0xff]   ;;  %s246_s1 = smov [#allocation2]  }
   0xb   :  { %194 = vmatpush3.bf16.msra.mxu0 %v214_v2  ;;  %v38_v10 = vld [vmem:[%s325_s2 + $0x10] sm:$0xff]  ;;  %v36_v11 = vld [vmem:[%s325_s2] sm:$0xff]  ;;  %v39_v13 = vld [vmem:[%s325_s2 + $0x18] sm:$0xff]  ;;  %s158_s11 = sshll.u32 %s246_s1, 4  ;;  %s159_s11 = int_to_ptr.vmem [resolvable:$true] %s158_s11 }
   0xc   :  { %195 = vmatprep.subr.bf16.mxu0 %v215_v3  ;;  %v37_v16 = vld [vmem:[%s325_s2 + $0x8] sm:$0xff]  ;;  %s222_s13 = scalar_lea.vmem %s159_s11, 512  ;;  %p227_p1 = scmp.lt.s32.totalorder %s159_s11, %s159_s11 }
   0xd   :  { %p223_p0 = scmp.ne.s32.totalorder %s159_s11, %s222_s13  ;;  %p228_p2 = scmp.lt.s32.totalorder %s222_s13, %s222_s13 }
   0xf   :  { %196 = vmatpush3.bf16.msra.mxu0 %v215_v3  ;;  %p229_p3 = por %p228_p2, %p227_p1 }
  0x10   :  { %197 = vmatprep.subr.bf16.mxu0 %v216_v5 }
  0x11   :  { %p230_p4 = pnand %p229_p3, %p223_p0 }
  0x13   :  { %198 = vmatpush3.bf16.msra.mxu0 %v216_v5 }
  0x14   :  { %199 = vmatprep.subr.bf16.mxu0 %v217_v6 }
  0x17   :  { %200 = vmatpush3.bf16.msra.mxu0 %v217_v6 }
  0x18   :  { %201 = vmatprep.subr.bf16.mxu0 %v218_v7 }
  0x1b   :  { %202 = vmatpush3.bf16.msra.mxu0 %v218_v7 }
  0x1c   :  { %203 = vmatprep.subr.bf16.mxu0 %v219_v8 }
  0x1f   :  { %204 = vmatpush3.bf16.msra.mxu0 %v219_v8 }
  0x22   :  { %206 = vmatmul.mubr.bf16.vlgmr.msra.gmra.mrb[0].mxu0 %v221_v9 }
  0xf5   :  { %v207_v12 = vpop.f32.mrb[0].mxu0 }
  0xf6   :  { %v143_v14 = vadd.f32 %v207_v12, %v38_v10  ;;  %v134_v15 = vpop.f32.mrb[1].mxu0 }
  0xf7   :  { %v135_v17 = vadd.f32 %v134_v15, %v36_v11  ;;  %v208_v18 = vpop.f32.mrb[2].mxu0 }
  0xf8   :  { %151 = vst [vmem:[#allocation2 + $0x10] sm:$0xff] %v143_v14  ;;  %v146_v19 = vadd.f32 %v208_v18, %v39_v13  ;;  %v137_v20 = vpop.f32.mrb[3].mxu0 }
  0xf9   :  { %149 = vst [vmem:[#allocation2] sm:$0xff] %v135_v17  ;;  %v138_v21 = vadd.f32 %v137_v20, %v37_v16 }
  0xfa   :  { %152 = vst [vmem:[#allocation2 + $0x18] sm:$0xff] %v146_v19 }
  0xfb   :  { %150 = vst [vmem:[#allocation2 + $0x8] sm:$0xff] %v138_v21 }
  0xfc   :  { %233 = shalt.err (!%p230_p4)
}
  0xfd   :  { %s234_s2 = scalar_lea.hbm %s326_s3, 512 }
  0xfe   :  { %p235_p5 = scmp.ne.s32.totalorder %s326_s3, %s234_s2  ;;  %p238_p6 = scmp.lt.u32.totalorder %s234_s2, %s326_s3 }
 0x100   :  { %p240_p7 = pnand %p238_p6, %p235_p5 }
 0x102   :  { %243 = shalt.err (!%p240_p7)
}
 0x103   :  { %s247_s20 = smov 128   ;;  %s248_s21 = smov 8  }
 0x104   :  { %164 = dma.vmem_to_hbm [thread:$0]  %s159_s11, 512, %s326_s3, [#allocation3], %s247_s20, %s247_s20, %s248_s21  }
 0x105   :  { %244 = dma.done.wait [#allocation3], 512  }
 0x106   :  { %245 = vsyncadd [#allocation3], 4294966784 }
 0x107   :  { %168 = vsyncpa [#allocation3], 1 }

</bundles_post_ra>
